<compile_context>
chip_gen: v5e
topology: v5e:2x2
jax: 0.10.0
libtpu: 0.0.40
codegen_flags: <defaults>
</compile_context>

<pallas_src>
import functools
import math

import jax
import jax.numpy as jnp
from jax.experimental import pallas as pl
from jax.experimental.pallas import tpu as pltpu


LANE = 128                                   # lane width / MXU alignment
_FUSED_VMEM_BUDGET = 24 * 1024 * 1024        # conservative, fits every TPU gen
_VMEM_RAISE_THRESHOLD = 12 * 1024 * 1024     # above this, raise scoped limit


def _round_up(v, m):
    return ((v + m - 1) // m) * m


def _pad2d(a, rows, cols):
    r, c = a.shape
    if r == rows and c == cols:
        return a
    return jnp.pad(a, ((0, rows - r), (0, cols - c)))


def _choose_batch_tile(m):
    if m <= 128:
        return _round_up(m, 16)   # single tile, bf16 sublane-pack aligned
    if m <= 2048:
        return 128                # >=2 grid steps -> both v7x TCs get work
    return 256                    # large batch: amortize per-step overhead


# ----------------------------------------------------------------------------
# Fused whole-MLP kernel (primary path)
# ----------------------------------------------------------------------------
def _mlp_fused_kernel(*refs, num_layers, sigmoid_output):
    # refs = (x, w0, b0, w1, b1, ..., w_{L-1}, b_{L-1}, out)
    x_ref = refs[0]
    o_ref = refs[-1]
    h = x_ref[...]                                      # bf16 (tm, K0_pad)
    for i in range(num_layers):
        w_ref = refs[1 + 2 * i]
        b_ref = refs[2 + 2 * i]
        y = jnp.dot(h, w_ref[...], preferred_element_type=jnp.float32)
        y = y + b_ref[...]                              # (1, N) broadcasts
        if i < num_layers - 1:
            h = jnp.maximum(y, 0.0).astype(jnp.bfloat16)
        else:
            if sigmoid_output:
                y = jax.nn.sigmoid(y)
            o_ref[...] = y.astype(o_ref.dtype)


def _mlp_fused_call(x_p, ws_p, bs_p, *, tm, sigmoid_output,
                    flops, transcendentals, vmem_limit_bytes=None):
    num_layers = len(ws_p)
    m_pad, k0 = x_p.shape
    n_out = ws_p[-1].shape[1]

    in_specs = [pl.BlockSpec((tm, k0), lambda i: (i, 0))]
    operands = [x_p]
    for w, b in zip(ws_p, bs_p):
        in_specs.append(pl.BlockSpec(w.shape, lambda i: (0, 0)))  # resident
        in_specs.append(pl.BlockSpec(b.shape, lambda i: (0, 0)))  # resident
        operands += [w, b]

    bytes_accessed = int(x_p.size * 2
                         + sum(int(w.size) * 2 for w in ws_p)
                         + sum(int(b.size) * 4 for b in bs_p)
                         + m_pad * n_out * 4)

    cp_kwargs = dict(dimension_semantics=("parallel",))
    if vmem_limit_bytes is not None:
        cp_kwargs["vmem_limit_bytes"] = int(vmem_limit_bytes)

    kernel = functools.partial(_mlp_fused_kernel, num_layers=num_layers,
                               sigmoid_output=sigmoid_output)
    return pl.pallas_call(
        kernel,
        out_shape=jax.ShapeDtypeStruct((m_pad, n_out), jnp.float32),
        grid_spec=pl.GridSpec(
            grid=(m_pad // tm,),
            in_specs=in_specs,
            out_specs=pl.BlockSpec((tm, n_out), lambda i: (i, 0)),
        ),
        compiler_params=pltpu.CompilerParams(**cp_kwargs),
        cost_estimate=pl.CostEstimate(
            flops=int(flops),
            transcendentals=int(transcendentals),
            bytes_accessed=bytes_accessed),
    )(*operands)


# ----------------------------------------------------------------------------
# Per-layer fallback (only when all weights do not fit the fused VMEM budget)
# ----------------------------------------------------------------------------
def _linear_kernel(x_ref, w_ref, b_ref, o_ref, *, activation):
    y = jnp.dot(x_ref[...], w_ref[...], preferred_element_type=jnp.float32)
    y = y + b_ref[...]
    if activation == "relu":
        y = jnp.maximum(y, 0.0)
    elif activation == "sigmoid":
        y = jax.nn.sigmoid(y)
    o_ref[...] = y.astype(o_ref.dtype)


def _pallas_linear(x_p, w_p, b_p, *, tm, activation, out_dtype):
    m_pad, k = x_p.shape
    _, n = w_p.shape
    tn = 256 if n % 256 == 0 else LANE
    out_bytes = 2 if out_dtype == jnp.bfloat16 else 4
    return pl.pallas_call(
        functools.partial(_linear_kernel, activation=activation),
        out_shape=jax.ShapeDtypeStruct((m_pad, n), out_dtype),
        grid_spec=pl.GridSpec(
            grid=(m_pad // tm, n // tn),
            in_specs=[
                pl.BlockSpec((tm, k), lambda i, j: (i, 0)),
                pl.BlockSpec((k, tn), lambda i, j: (0, j)),
                pl.BlockSpec((1, tn), lambda i, j: (0, j)),
            ],
            out_specs=pl.BlockSpec((tm, tn), lambda i, j: (i, j)),
        ),
        compiler_params=pltpu.CompilerParams(
            dimension_semantics=("parallel", "parallel")),
        cost_estimate=pl.CostEstimate(
            flops=2 * m_pad * k * n,
            transcendentals=m_pad * n if activation == "sigmoid" else 0,
            bytes_accessed=int(x_p.size * 2 + w_p.size * 2 + b_p.size * 4
                               + m_pad * n * out_bytes)),
    )(x_p, w_p, b_p)


def _mlp_layerwise_call(x_p, ws_p, bs_p, *, tm, sigmoid_output):
    # TODO(synk): add a K-tiled accumulator variant for extremely large in_dims.
    num_layers = len(ws_p)
    h = x_p
    for i, (w, b) in enumerate(zip(ws_p, bs_p)):
        last = i == num_layers - 1
        act = ("sigmoid" if sigmoid_output else "none") if last else "relu"
        out_dtype = jnp.float32 if last else jnp.bfloat16
        h = _pallas_linear(h, w, b, tm=tm, activation=act, out_dtype=out_dtype)
    return h


# ----------------------------------------------------------------------------
# Public forward (mirrors MLP.forward semantics)
# ----------------------------------------------------------------------------
def mlp_forward(x, weights, biases, sigmoid_output: bool = False):
    """ReLU after every layer except the last; optional sigmoid on the output.

    x: (M, input_dim) f32; weights[i]: (in_i, out_i) f32; biases[i]: (1, out_i).
    """
    num_layers = len(weights)
    assert num_layers >= 1 and len(biases) == num_layers
    M, in_dim = x.shape
    out_dim = weights[-1].shape[1]
    out_dtype = x.dtype

    # ---- layout plumbing: lane-dense feature dims, tile-aligned batch ----
    dims = [in_dim] + [w.shape[1] for w in weights]
    dims_pad = [_round_up(d, LANE) for d in dims]
    tm = _choose_batch_tile(M)
    m_pad = _round_up(M, tm)

    x_p = _pad2d(x, m_pad, dims_pad[0]).astype(jnp.bfloat16)
    ws_p = [_pad2d(w, dims_pad[i], dims_pad[i + 1]).astype(jnp.bfloat16)
            for i, w in enumerate(weights)]
    bs_p = [_pad2d(b, 1, dims_pad[i + 1]).astype(jnp.float32)
            for i, b in enumerate(biases)]

    # ---- conservative VMEM estimate for the fused path (x2 double buffers) ----
    fused_bytes = 2 * (
        tm * dims_pad[0] * 2                         # x tile (bf16)
        + sum(int(w.size) * 2 for w in ws_p)         # all weights (bf16)
        + sum(int(b.size) * 4 for b in bs_p)         # all biases (f32)
        + tm * dims_pad[-1] * 4                      # out tile (f32)
    ) + tm * max(dims_pad) * 4                       # live intermediate act

    flops = 2 * M * sum(dims[i] * dims[i + 1] for i in range(num_layers))
    transcendentals = M * out_dim if sigmoid_output else 0

    if fused_bytes <= _FUSED_VMEM_BUDGET:
        vmem_limit = (48 * 1024 * 1024
                      if fused_bytes > _VMEM_RAISE_THRESHOLD else None)
        out_p = _mlp_fused_call(x_p, ws_p, bs_p, tm=tm,
                                sigmoid_output=sigmoid_output,
                                flops=flops, transcendentals=transcendentals,
                                vmem_limit_bytes=vmem_limit)
    else:
        out_p = _mlp_layerwise_call(x_p, ws_p, bs_p, tm=tm,
                                    sigmoid_output=sigmoid_output)

    return out_p[:M, :out_dim].astype(out_dtype)


def init_mlp_params(key, input_dim, hidden_dim, output_dim, num_layers):
    """nn.Linear default init (uniform +-1/sqrt(fan_in)); W stored (in, out)."""
    h = [hidden_dim] * (num_layers - 1)
    dims = list(zip([input_dim] + h, h + [output_dim]))
    weights, biases = [], []
    for (n_in, n_out) in dims:
        key, kw, kb = jax.random.split(key, 3)
        bound = 1.0 / math.sqrt(n_in)
        weights.append(
            jax.random.uniform(kw, (n_in, n_out), jnp.float32, -bound, bound))
        biases.append(
            jax.random.uniform(kb, (1, n_out), jnp.float32, -bound, bound))
    return weights, biases


def _reference(x, weights, biases, sigmoid_output):
    """Plain-JAX reference with the same bf16-matmul / f32-accumulate math."""
    num_layers = len(weights)
    h = x
    for i, (w, b) in enumerate(zip(weights, biases)):
        y = jnp.dot(h.astype(jnp.bfloat16), w.astype(jnp.bfloat16),
                    preferred_element_type=jnp.float32) + b
        h = jnp.maximum(y, 0.0) if i < num_layers - 1 else y
    if sigmoid_output:
        h = jax.nn.sigmoid(h)
    return h


if __name__ == "__main__":
    # Small shapes consistent with MLP(input_dim, hidden_dim, output_dim, num_layers)
    input_dim, hidden_dim, output_dim, num_layers = 32, 32, 16, 3

    key = jax.random.PRNGKey(0)
    key, kx1, kx2 = jax.random.split(key, 3)
    weights, biases = init_mlp_params(
        key, input_dim, hidden_dim, output_dim, num_layers)

    # Case 1: batch=8, sigmoid on the output.
    x1 = jax.random.normal(kx1, (8, input_dim), jnp.float32)
    out1 = jax.block_until_ready(
        mlp_forward(x1, weights, biases, sigmoid_output=True))
    ref1 = _reference(x1, weights, biases, sigmoid_output=True)
    assert out1.shape == (8, output_dim)
    assert jnp.allclose(out1, ref1, atol=2e-3, rtol=2e-3)

    # Case 2: batch not a multiple of any tile (13), no sigmoid.
    x2 = jax.random.normal(kx2, (13, input_dim), jnp.float32)
    out2 = jax.block_until_ready(
        mlp_forward(x2, weights, biases, sigmoid_output=False))
    ref2 = _reference(x2, weights, biases, sigmoid_output=False)
    assert out2.shape == (13, output_dim)
    assert jnp.allclose(out2, ref2, atol=2e-3, rtol=2e-3)

    print("KERNEL_OK")
</pallas_src>

<mosaic_0001>
module attributes {stable_mosaic.version = 11 : i64} {
  func.func @_mlp_fused_kernel(%arg0: i32, %arg1: memref<16x128xbf16, #tpu.memory_space<vmem>>, %arg2: memref<128x128xbf16, #tpu.memory_space<vmem>>, %arg3: memref<1x128xf32, #tpu.memory_space<vmem>>, %arg4: memref<128x128xbf16, #tpu.memory_space<vmem>>, %arg5: memref<1x128xf32, #tpu.memory_space<vmem>>, %arg6: memref<128x128xbf16, #tpu.memory_space<vmem>>, %arg7: memref<1x128xf32, #tpu.memory_space<vmem>>, %arg8: memref<16x128xf32, #tpu.memory_space<vmem>>) attributes {dimension_semantics = [#tpu.dimension_semantics<parallel>], iteration_bounds = array<i64: 1>, scalar_prefetch = 0 : i64, scratch_operands = 0 : i64, tpu.core_type = #tpu.core_type<tc>, window_params = [{transform_indices = @transform_0, window_bounds = array<i64: 16, 128>}, {pipeline_mode = #tpu.pipeline_mode<synchronous>, transform_indices = @transform_1, window_bounds = array<i64: 128, 128>}, {pipeline_mode = #tpu.pipeline_mode<synchronous>, transform_indices = @transform_2, window_bounds = array<i64: 1, 128>}, {pipeline_mode = #tpu.pipeline_mode<synchronous>, transform_indices = @transform_3, window_bounds = array<i64: 128, 128>}, {pipeline_mode = #tpu.pipeline_mode<synchronous>, transform_indices = @transform_4, window_bounds = array<i64: 1, 128>}, {pipeline_mode = #tpu.pipeline_mode<synchronous>, transform_indices = @transform_5, window_bounds = array<i64: 128, 128>}, {pipeline_mode = #tpu.pipeline_mode<synchronous>, transform_indices = @transform_6, window_bounds = array<i64: 1, 128>}, {transform_indices = @transform_7, window_bounds = array<i64: 16, 128>}]} {
    %c0 = arith.constant 0 : index
    %c0_0 = arith.constant 0 : index
    %0 = vector.load %arg1[%c0, %c0_0] : memref<16x128xbf16, #tpu.memory_space<vmem>>, vector<16x128xbf16>
    %c0_1 = arith.constant 0 : index
    %c0_2 = arith.constant 0 : index
    %1 = vector.load %arg2[%c0_1, %c0_2] : memref<128x128xbf16, #tpu.memory_space<vmem>>, vector<128x128xbf16>
    %cst = arith.constant dense<0.000000e+00> : vector<16x128xf32>
    %2 = tpu.matmul %0, %1, %cst {dimension_numbers = #tpu.dot_dimension_numbers<[1], [0], [0], [1], [0, 0, 1, 1], [], []>} : vector<16x128xbf16>, vector<128x128xbf16>, vector<16x128xf32> -> vector<16x128xf32>
    %c0_3 = arith.constant 0 : index
    %c0_4 = arith.constant 0 : index
    %3 = vector.load %arg3[%c0_3, %c0_4] : memref<1x128xf32, #tpu.memory_space<vmem>>, vector<1x128xf32>
    %4 = vector.broadcast %3 : vector<1x128xf32> to vector<16x128xf32>
    %5 = arith.addf %2, %4 : vector<16x128xf32>
    %cst_5 = arith.constant 0.000000e+00 : f32
    %6 = vector.broadcast %cst_5 : f32 to vector<16x128xf32>
    %7 = arith.maximumf %5, %6 : vector<16x128xf32>
    %8 = arith.truncf %7 : vector<16x128xf32> to vector<16x128xbf16>
    %c0_6 = arith.constant 0 : index
    %c0_7 = arith.constant 0 : index
    %9 = vector.load %arg4[%c0_6, %c0_7] : memref<128x128xbf16, #tpu.memory_space<vmem>>, vector<128x128xbf16>
    %cst_8 = arith.constant dense<0.000000e+00> : vector<16x128xf32>
    %10 = tpu.matmul %8, %9, %cst_8 {dimension_numbers = #tpu.dot_dimension_numbers<[1], [0], [0], [1], [0, 0, 1, 1], [], []>} : vector<16x128xbf16>, vector<128x128xbf16>, vector<16x128xf32> -> vector<16x128xf32>
    %c0_9 = arith.constant 0 : index
    %c0_10 = arith.constant 0 : index
    %11 = vector.load %arg5[%c0_9, %c0_10] : memref<1x128xf32, #tpu.memory_space<vmem>>, vector<1x128xf32>
    %12 = vector.broadcast %11 : vector<1x128xf32> to vector<16x128xf32>
    %13 = arith.addf %10, %12 : vector<16x128xf32>
    %cst_11 = arith.constant 0.000000e+00 : f32
    %14 = vector.broadcast %cst_11 : f32 to vector<16x128xf32>
    %15 = arith.maximumf %13, %14 : vector<16x128xf32>
    %16 = arith.truncf %15 : vector<16x128xf32> to vector<16x128xbf16>
    %c0_12 = arith.constant 0 : index
    %c0_13 = arith.constant 0 : index
    %17 = vector.load %arg6[%c0_12, %c0_13] : memref<128x128xbf16, #tpu.memory_space<vmem>>, vector<128x128xbf16>
    %cst_14 = arith.constant dense<0.000000e+00> : vector<16x128xf32>
    %18 = tpu.matmul %16, %17, %cst_14 {dimension_numbers = #tpu.dot_dimension_numbers<[1], [0], [0], [1], [0, 0, 1, 1], [], []>} : vector<16x128xbf16>, vector<128x128xbf16>, vector<16x128xf32> -> vector<16x128xf32>
    %c0_15 = arith.constant 0 : index
    %c0_16 = arith.constant 0 : index
    %19 = vector.load %arg7[%c0_15, %c0_16] : memref<1x128xf32, #tpu.memory_space<vmem>>, vector<1x128xf32>
    %20 = vector.broadcast %19 : vector<1x128xf32> to vector<16x128xf32>
    %21 = arith.addf %18, %20 : vector<16x128xf32>
    %22 = arith.negf %21 : vector<16x128xf32>
    %23 = math.exp %22 : vector<16x128xf32>
    %cst_17 = arith.constant 1.000000e+00 : f32
    %24 = vector.broadcast %cst_17 : f32 to vector<16x128xf32>
    %25 = arith.addf %24, %23 : vector<16x128xf32>
    %26 = arith.divf %24, %25 : vector<16x128xf32>
    %c0_18 = arith.constant 0 : index
    %c0_19 = arith.constant 0 : index
    %27 = vector.load %arg8[%c0_18, %c0_19] : memref<16x128xf32, #tpu.memory_space<vmem>>, vector<16x128xf32>
    tpu.vector_store %arg8[%c0_18, %c0_19], %26 {strides = array<i32>} : memref<16x128xf32, #tpu.memory_space<vmem>>, vector<16x128xf32>,
    return
  }
  func.func @transform_0(%arg0: i32) -> (i32, i32) {
    %c0_i32 = arith.constant 0 : i32
    %c0_i32_0 = arith.constant 0 : i32
    return %arg0, %c0_i32 : i32, i32
  }
  func.func @transform_1(%arg0: i32) -> (i32, i32) {
    %c0_i32 = arith.constant 0 : i32
    %c0_i32_0 = arith.constant 0 : i32
    %c0_i32_1 = arith.constant 0 : i32
    return %c0_i32, %c0_i32_0 : i32, i32
  }
  func.func @transform_2(%arg0: i32) -> (i32, i32) {
    %c0_i32 = arith.constant 0 : i32
    %c0_i32_0 = arith.constant 0 : i32
    %c0_i32_1 = arith.constant 0 : i32
    return %c0_i32, %c0_i32_0 : i32, i32
  }
  func.func @transform_3(%arg0: i32) -> (i32, i32) {
    %c0_i32 = arith.constant 0 : i32
    %c0_i32_0 = arith.constant 0 : i32
    %c0_i32_1 = arith.constant 0 : i32
    return %c0_i32, %c0_i32_0 : i32, i32
  }
  func.func @transform_4(%arg0: i32) -> (i32, i32) {
    %c0_i32 = arith.constant 0 : i32
    %c0_i32_0 = arith.constant 0 : i32
    %c0_i32_1 = arith.constant 0 : i32
    return %c0_i32, %c0_i32_0 : i32, i32
  }
  func.func @transform_5(%arg0: i32) -> (i32, i32) {
    %c0_i32 = arith.constant 0 : i32
    %c0_i32_0 = arith.constant 0 : i32
    %c0_i32_1 = arith.constant 0 : i32
    return %c0_i32, %c0_i32_0 : i32, i32
  }
  func.func @transform_6(%arg0: i32) -> (i32, i32) {
    %c0_i32 = arith.constant 0 : i32
    %c0_i32_0 = arith.constant 0 : i32
    %c0_i32_1 = arith.constant 0 : i32
    return %c0_i32, %c0_i32_0 : i32, i32
  }
  func.func @transform_7(%arg0: i32) -> (i32, i32) {
    %c0_i32 = arith.constant 0 : i32
    %c0_i32_0 = arith.constant 0 : i32
    return %arg0, %c0_i32 : i32, i32
  }
}

</mosaic_0001>

<bundles_post_ra>
// kernel: tpu_custom_call.1
= control target key start
LH: loop header
LB: loop body
LE: loop exit
PB: predicated region body
PF: predicated region fallthrough
CT: control target
= control target key end

     0   :  { %12 = vsyncpa [#allocation3], 0  ;;  %s759_s0 = inlined_call_operand.hbm [shape: bf16[16,128], index: 0, kind: input, shape index: {}]   ;;  %s760_s1 = inlined_call_operand.hbm [shape: bf16[128,128], index: 1, kind: input, shape index: {}]   ;;  %s761_s2 = inlined_call_operand.vmem [shape: f32[1,128], index: 2, kind: input, shape index: {}]   ;;  %s762_s3 = inlined_call_operand.hbm [shape: bf16[128,128], index: 3, kind: input, shape index: {}]   ;;  %s763_s4 = inlined_call_operand.vmem [shape: f32[1,128], index: 4, kind: input, shape index: {}]   ;;  %s764_s5 = inlined_call_operand.hbm [shape: bf16[128,128], index: 5, kind: input, shape index: {}]   ;;  %s765_s6 = inlined_call_operand.vmem [shape: f32[1,128], index: 6, kind: input, shape index: {}]   ;;  %s766_s7 = inlined_call_operand.hbm [shape: f32[16,128], index: 7, kind: output, shape index: {}]  }
   0x1   :  { %13 = vsyncpa [#allocation6], 0 }
   0x2   :  { %14 = vsyncpa [#allocation9], 0 }
   0x3   :  { %15 = vsyncpa [#allocation4], 0  ;;  %s33_s26 = sshll.u32 %s760_s1, 4  ;;  %s686_s27 = smov [#allocation5]   ;;  %s34_s26 = int_to_ptr.hbm [resolvable:$true] %s33_s26 }
   0x4   :  { %s35_s28 = sshll.u32 %s686_s27, 4  ;;  %s20_s8 = sshll.u32 %s759_s0, 4  ;;  %s36_s28 = int_to_ptr.vmem [resolvable:$true] %s35_s28  ;;  %s21_s8 = int_to_ptr.hbm [resolvable:$true] %s20_s8 }
   0x5   :  { %s687_s9 = smov 64   ;;  %s688_s10 = smov 4  }
   0x6   :  { %41 = dma.hbm_to_vmem [thread:$0]  %s34_s26, 1024, %s36_s28, [#allocation6], %s687_s9, %s687_s9, %s688_s10  }
   0x7   :  { %s689_s11 = smov [#allocation2]   ;;  %s48_s15 = sshll.u32 %s762_s3, 4  ;;  %s49_s15 = int_to_ptr.hbm [resolvable:$true] %s48_s15 }
   0x8   :  { %s22_s12 = sshll.u32 %s689_s11, 4  ;;  %s63_s17 = sshll.u32 %s764_s5, 4  ;;  %s23_s12 = int_to_ptr.vmem [resolvable:$true] %s22_s12  ;;  %s64_s17 = int_to_ptr.hbm [resolvable:$true] %s63_s17 }
   0x9   :  { %28 = dma.hbm_to_vmem [thread:$0]  %s21_s8, 128, %s23_s12, [#allocation3], %s687_s9, %s687_s9, %s688_s10  }
   0xa   :  { %s690_s18 = smov [#allocation7]   ;;  %s691_s0 = smov [#allocation8]  }
   0xb   :  { %s50_s19 = sshll.u32 %s690_s18, 4  ;;  %s65_s20 = sshll.u32 %s691_s0, 4  ;;  %s51_s19 = int_to_ptr.vmem [resolvable:$true] %s50_s19  ;;  %s66_s20 = int_to_ptr.vmem [resolvable:$true] %s65_s20 }
   0xc   :  { %56 = dma.hbm_to_vmem [thread:$0]  %s49_s15, 1024, %s51_s19, [#allocation6], %s687_s9, %s687_s9, %s688_s10  }
   0xd   :  { %71 = dma.hbm_to_vmem [thread:$0]  %s64_s17, 1024, %s66_s20, [#allocation9], %s687_s9, %s687_s9, %s688_s10  }
   0xe   :  { %678 = dma.done.wait [#allocation3], 128  }
   0xf   :  { %679 = vsyncadd [#allocation3], 4294967168 }
  0x10   :  { %680 = dma.done.wait [#allocation6], 2048  }
  0x11   :  { %681 = vsyncadd [#allocation6], 4294965248 }
  0x12   :  { %682 = dma.done.wait [#allocation9], 1024  }
  0x13   :  { %683 = vsyncadd [#allocation9], 4294966272  ;;  %v521_v0 = vld [vmem:[#allocation5 + $0x38] sm:$0xff]  ;;  %v520_v1 = vld [vmem:[#allocation5 + $0x30] sm:$0xff]  ;;  %s396_s26 = sshll.u32 %s766_s7, 4  ;;  %s693_s27 = smov 128   ;;  %s397_s26 = int_to_ptr.hbm [resolvable:$true] %s396_s26 }
  0x14   :  { %166 = vmatpush.bf16.msra.mxu0 %v521_v0  ;;  %v529_v2 = vld [vmem:[#allocation7 + $0x38] sm:$0xff]  ;;  %v528_v3 = vld [vmem:[#allocation7 + $0x30] sm:$0xff]  ;;  %v519_v4 = vld [vmem:[#allocation5 + $0x28] sm:$0xff]  ;;  %s694_s28 = smov 8  }
  0x15   :  { %251 = vmatpush.bf16.msra.mxu1 %v529_v2  ;;  %v527_v5 = vld [vmem:[#allocation7 + $0x28] sm:$0xff]  ;;  %v518_v6 = vld [vmem:[#allocation5 + $0x20] sm:$0xff]  ;;  %v517_v8 = vld [vmem:[#allocation5 + $0x18] sm:$0xff] }
  0x16   :  { %v526_v7 = vld [vmem:[#allocation7 + $0x20] sm:$0xff]  ;;  %v516_v9 = vld [vmem:[#allocation5 + $0x10] sm:$0xff]  ;;  %v515_v10 = vld [vmem:[#allocation5 + $0x8] sm:$0xff] }
  0x17   :  { %v514_v11 = vld [vmem:[#allocation5] sm:$0xff]  ;;  %v513_v12 = vld [vmem:[#allocation2] sm:$0xff]  ;;  %v524_v14 = vld [vmem:[#allocation7 + $0x10] sm:$0xff] }
  0x18   :  { %167 = vmatpush.bf16.msra.mxu0 %v520_v1  ;;  %v525_v13 = vld [vmem:[#allocation7 + $0x18] sm:$0xff]  ;;  %v523_v15 = vld [vmem:[#allocation7 + $0x8] sm:$0xff]  ;;  %v522_v16 = vld [vmem:[#allocation7] sm:$0xff] }
  0x19   :  { %252 = vmatpush.bf16.msra.mxu1 %v528_v3  ;;  %v537_v17 = vld [vmem:[#allocation8 + $0x38] sm:$0xff]  ;;  %v536_v18 = vld [vmem:[#allocation8 + $0x30] sm:$0xff]  ;;  %v535_v19 = vld [vmem:[#allocation8 + $0x28] sm:$0xff] }
  0x1a   :  { %336 = vmatpush.bf16.msra.mxu2 %v537_v17  ;;  %v534_v20 = vld [vmem:[#allocation8 + $0x20] sm:$0xff]  ;;  %v547_v22 = vld [vmem:[%s761_s2] ss:$0 sm:$0xff]  ;;  %v532_v30 = vld [vmem:[#allocation8 + $0x10] sm:$0xff] }
  0x1b   :  { %v533_v29 = vld [vmem:[#allocation8 + $0x18] sm:$0xff]  ;;  %v531_v31 = vld [vmem:[#allocation8 + $0x8] sm:$0xff]  ;;  %v530_v32 = vld [vmem:[#allocation8] sm:$0xff] }
  0x1c   :  { %168 = vmatpush.bf16.msra.mxu0 %v519_v4  ;;  %v548_v34 = vld [vmem:[%s763_s4] ss:$0 sm:$0xff]  ;;  %s692_s4 = smov [#allocation10]  }
  0x1d   :  { %253 = vmatpush.bf16.msra.mxu1 %v527_v5  ;;  %v549_v41 = vld [vmem:[%s765_s6] ss:$0 sm:$0xff]  ;;  %s394_s6 = sshll.u32 %s692_s4, 4  ;;  %s395_s6 = int_to_ptr.vmem [resolvable:$true] %s394_s6 }
  0x1e   :  { %337 = vmatpush.bf16.msra.mxu2 %v536_v18 }
  0x20   :  { %169 = vmatpush.bf16.msra.mxu0 %v518_v6 }
  0x21   :  { %254 = vmatpush.bf16.msra.mxu1 %v526_v7 }
  0x22   :  { %338 = vmatpush.bf16.msra.mxu2 %v535_v19 }
  0x24   :  { %170 = vmatpush.bf16.msra.mxu0 %v517_v8 }
  0x25   :  { %255 = vmatpush.bf16.msra.mxu1 %v525_v13 }
  0x26   :  { %339 = vmatpush.bf16.msra.mxu2 %v534_v20 }
  0x28   :  { %171 = vmatpush.bf16.msra.mxu0 %v516_v9 }
  0x29   :  { %256 = vmatpush.bf16.msra.mxu1 %v524_v14 }
  0x2a   :  { %340 = vmatpush.bf16.msra.mxu2 %v533_v29 }
  0x2c   :  { %172 = vmatpush.bf16.msra.mxu0 %v515_v10 }
  0x2d   :  { %257 = vmatpush.bf16.msra.mxu1 %v523_v15 }
  0x2e   :  { %341 = vmatpush.bf16.msra.mxu2 %v532_v30 }
  0x30   :  { %173 = vmatpush.bf16.msra.mxu0 %v514_v11 }
  0x31   :  { %258 = vmatpush.bf16.msra.mxu1 %v522_v16 }
  0x32   :  { %342 = vmatpush.bf16.msra.mxu2 %v531_v31 }
  0x33   :  { %174 = vmatmul.bf16.vlgmr.msra.gmra.mxu0 %v513_v12 }
  0x36   :  { %343 = vmatpush.bf16.msra.mxu2 %v530_v32 }
  0xb0   :  { %v175_v21 = vpop.f32.mrf.mxu0 }
  0xb1   :  { %v176_v23 = vadd.f32 %v547_v22, %v175_v21 }
  0xb3   :  { %v180_v26 = vmax.f32 %v176_v23, 0.0 }
  0xb8   :  { %v177_v24 = vpop.f32.mrf.mxu0 }
  0xb9   :  { %v178_v25 = vadd.f32 %v547_v22, %v177_v24 }
  0xbb   :  { %v181_v27 = vmax.f32 %v178_v25, 0.0 }
  0xbd   :  { %v182_v28 = vpack.c.bf16 %v181_v27, %v180_v26 }
  0xbf   :  { %259 = vmatmul.bf16.vlgmr.msra.gmra.mxu1 %v182_v28 }
 0x13c   :  { %v260_v33 = vpop.f32.mrf.mxu1 }
 0x13d   :  { %v261_v35 = vadd.f32 %v548_v34, %v260_v33 }
 0x13f   :  { %v265_v38 = vmax.f32 %v261_v35, 0.0 }
 0x144   :  { %v262_v36 = vpop.f32.mrf.mxu1 }
 0x145   :  { %v263_v37 = vadd.f32 %v548_v34, %v262_v36 }
 0x147   :  { %v266_v39 = vmax.f32 %v263_v37, 0.0 }
 0x149   :  { %v267_v40 = vpack.c.bf16 %v266_v39, %v265_v38 }
 0x14b   :  { %344 = vmatmul.bf16.vlgmr.msra.gmra.mxu2 %v267_v40 }
 0x1ce   :  { %v345_v42 = vpop.f32.mrf.mxu2 }
 0x1cf   :  { %v346_v43 = vadd.f32 %v549_v41, %v345_v42 }
 0x1d1   :  { %v511_v44 = vmul.f32 -1.442695, %v346_v43 }
 0x1d3   :  { %550 = vpow2.f32 %v511_v44 }
 0x1d6   :  { %v347_v45 = vpop.f32.mrf.mxu2 }
 0x1d7   :  { %v348_v46 = vadd.f32 %v549_v41, %v347_v45 }
 0x1d9   :  { %v551_v47 = vpop.eup %550  ;;  %v512_v48 = vmul.f32 -1.442695, %v348_v46 }
 0x1da   :  { %v356_v49 = vadd.f32 1.0, %v551_v47 }
 0x1db   :  { %552 = vpow2.f32 %v512_v48 }
 0x1dc   :  { %554 = vrcp.f32 %v356_v49  ;;  %v369_v55 = vand.u32 2147483648, %v356_v49  ;;  %v367_v57 = vand.u32 2147483647, %v356_v49  ;;  %vm363_vm1 = vweird.f32 %v356_v49 }
 0x1de   :  { %v370_v60 = vor.u32 1.1754944e-38, %v369_v55  ;;  %vm368_vm3 = vcmp.eq.f32.partialorder %v367_v57, 8.507059e+37 }
 0x1e1   :  { %v553_v50 = vpop.eup %552 }
 0x1e2   :  { %v555_v51 = vpop.eup %554  ;;  %v357_v52 = vadd.f32 1.0, %v553_v50 }
 0x1e3   :  { %v359_v53 = vmul.f32 %v555_v51, %v356_v49  ;;  %vm364_vm0 = vweird.f32 %v555_v51 }
 0x1e4   :  { %556 = vrcp.f32 %v357_v52  ;;  %vm365_vm2 = vmor %vm363_vm1, %vm364_vm0  ;;  %v384_v1 = vand.u32 2147483648, %v357_v52  ;;  %v382_v3 = vand.u32 2147483647, %v357_v52  ;;  %vm378_vm5 = vweird.f32 %v357_v52 }
 0x1e5   :  { %v360_v54 = vsub.f32 1.0, %v359_v53 }
 0x1e6   :  { %v385_v5 = vor.u32 1.1754944e-38, %v384_v1  ;;  %vm383_vm7 = vcmp.eq.f32.partialorder %v382_v3, 8.507059e+37 }
 0x1e7   :  { %v361_v56 = vmul.f32 %v555_v51, %v360_v54 }
 0x1e9   :  { %v362_v58 = vadd.f32 %v555_v51, %v361_v56 }
 0x1ea   :  { %v557_v59 = vpop.eup %556 }
 0x1eb   :  { %v374_v61 = vmul.f32 %v557_v59, %v357_v52  ;;  %v366_v62 = vsel %vm365_vm2, %v555_v51, %v362_v58  ;;  %vm379_vm4 = vweird.f32 %v557_v59 }
 0x1ec   :  { %v371_v63 = vsel %vm368_vm3, %v370_v60, %v366_v62  ;;  %vm380_vm6 = vmor %vm378_vm5, %vm379_vm4 }
 0x1ed   :  { %v375_v0 = vsub.f32 1.0, %v374_v61  ;;  %388 = vst [vmem:[#allocation10] sm:$0xff] %v371_v63 }
 0x1ef   :  { %v376_v2 = vmul.f32 %v557_v59, %v375_v0 }
 0x1f1   :  { %v377_v4 = vadd.f32 %v557_v59, %v376_v2 }
 0x1f3   :  { %v381_v6 = vsel %vm380_vm6, %v557_v59, %v377_v4 }
 0x1f4   :  { %v386_v7 = vsel %vm383_vm7, %v385_v5, %v381_v6 }
 0x1f5   :  { %389 = vst [vmem:[#allocation10 + $0x8] sm:$0xff] %v386_v7 }
 0x1f6   :  { %402 = dma.vmem_to_hbm [thread:$0]  %s395_s6, 256, %s397_s26, [#allocation4], %s693_s27, %s693_s27, %s694_s28  }
 0x1f7   :  { %684 = dma.done.wait [#allocation4], 256  }
 0x1f8   :  { %685 = vsyncadd [#allocation4], 4294967040 }
 0x1f9   :  { %407 = vsyncpa [#allocation3], 1 }
 0x1fa   :  { %408 = vsyncpa [#allocation6], 1 }
 0x1fb   :  { %409 = vsyncpa [#allocation9], 1 }
 0x1fc   :  { %410 = vsyncpa [#allocation4], 1 }

</bundles_post_ra>
